<compile_context>
chip_gen: v7x
topology: tpu7x:2x2x1
jax: 0.10.0
libtpu: 0.0.40
codegen_flags: <defaults>
</compile_context>

<pallas_src>
import functools

import jax
import jax.numpy as jnp
from jax.experimental import pallas as pl
from jax.experimental.pallas import tpu as pltpu

INPUT_SIZE = 4
HIDDEN_SIZE = 64
OUTPUT_SIZE = 2

_LANE = 128           # batch tile must be a multiple of the 128-lane axis
_MAX_BLOCK_B = 16384  # VMEM-safe tile cap (~9-13 MiB live; fits v7x 32 MiB scoped VMEM)
_MIN_SPLIT_B = 4096   # only split a single-tile batch in two if each half is >= this


def _mlp_kernel(xt_ref, w1t_ref, b1_ref, w2t_ref, b2_ref, w3t_ref, b3_ref, o_ref):
    # Transposed formulation: activations are (features, batch_tile) so the
    # batch lives on the lane axis -> lane-dense loads/stores everywhere.
    #   y^T = W3^T @ relu(W2^T @ relu(W1^T @ x^T + b1) + b2) + b3
    # Bias-add / ReLU stay in f32 on the VPU; the cast back to the weight dtype
    # only feeds the next matmul (relevant for the optional bf16 fast path).
    xt = xt_ref[...]
    h1 = jnp.dot(w1t_ref[...], xt, preferred_element_type=jnp.float32) + b1_ref[...]
    h1 = jnp.maximum(h1, 0.0).astype(w2t_ref.dtype)
    h2 = jnp.dot(w2t_ref[...], h1, preferred_element_type=jnp.float32) + b2_ref[...]
    h2 = jnp.maximum(h2, 0.0).astype(w3t_ref.dtype)
    y = jnp.dot(w3t_ref[...], h2, preferred_element_type=jnp.float32) + b3_ref[...]
    o_ref[...] = y.astype(o_ref.dtype)


def _choose_block_b(batch, requested):
    """Pick a lane-aligned, VMEM-safe batch tile (all shapes static at trace time)."""
    blk = max(_LANE, (int(requested) // _LANE) * _LANE)
    blk = min(blk, _MAX_BLOCK_B)
    if batch > blk:
        return blk                              # natural multi-step grid
    if batch >= 2 * _MIN_SPLIT_B:
        # Split into two tiles so a 2-TensorCore chip (v7x) can shard the
        # "parallel" grid axis; the extra ~0.35us step is negligible at >=4096.
        half = pl.cdiv(batch, 2)
        return pl.cdiv(half, _LANE) * _LANE
    # Small batch: one maximal tile (no pure-overhead split on 1-TC v5e/v6e).
    return pl.cdiv(batch, _LANE) * _LANE


def _prep_params(params, compute_dtype):
    w1, b1, w2, b2, w3, b3 = params
    return (
        w1.T.astype(compute_dtype),                      # (H, I)
        b1.reshape(HIDDEN_SIZE, 1).astype(jnp.float32),  # column biases: broadcast
        w2.T.astype(compute_dtype),                      # (H, H)   along the lane axis
        b2.reshape(HIDDEN_SIZE, 1).astype(jnp.float32),
        w3.T.astype(compute_dtype),                      # (O, H)
        b3.reshape(OUTPUT_SIZE, 1).astype(jnp.float32),
    )


def _run_mlp_t(xt_pad, prepped, block_b):
    """xt_pad: (INPUT_SIZE, B_pad), B_pad % block_b == 0 -> (OUTPUT_SIZE, B_pad) f32."""
    w1t, b1c, w2t, b2c, w3t, b3c = prepped
    _, b_pad = xt_pad.shape
    grid_b = b_pad // block_b
    in_specs = [
        pl.BlockSpec((INPUT_SIZE, block_b), lambda i: (0, i)),        # x^T tile
        pl.BlockSpec((HIDDEN_SIZE, INPUT_SIZE), lambda i: (0, 0)),    # W1^T (resident)
        pl.BlockSpec((HIDDEN_SIZE, 1), lambda i: (0, 0)),             # b1
        pl.BlockSpec((HIDDEN_SIZE, HIDDEN_SIZE), lambda i: (0, 0)),   # W2^T
        pl.BlockSpec((HIDDEN_SIZE, 1), lambda i: (0, 0)),             # b2
        pl.BlockSpec((OUTPUT_SIZE, HIDDEN_SIZE), lambda i: (0, 0)),   # W3^T
        pl.BlockSpec((OUTPUT_SIZE, 1), lambda i: (0, 0)),             # b3
    ]
    out_specs = pl.BlockSpec((OUTPUT_SIZE, block_b), lambda i: (0, i))
    return pl.pallas_call(
        _mlp_kernel,
        out_shape=jax.ShapeDtypeStruct((OUTPUT_SIZE, b_pad), jnp.float32),
        grid_spec=pltpu.PrefetchScalarGridSpec(
            num_scalar_prefetch=0,
            grid=(grid_b,),
            in_specs=in_specs,
            out_specs=out_specs,
        ),
        compiler_params=pltpu.CompilerParams(
            # TODO(synk): verify in the v7x trace that this single "parallel"
            # axis really shards across both TensorCores; otherwise move to an
            # explicit core axis (pltpu.CORE_PARALLEL / create_tensorcore_mesh).
            dimension_semantics=("parallel",),
        ),
    )(xt_pad, w1t, b1c, w2t, b2c, w3t, b3c)


@functools.partial(jax.jit, static_argnames=("block_b", "use_bf16"))
def thermal_regression_forward(x, params, *, block_b=8192, use_bf16=False):
    """x: (B, 4) f32 -> (B, 2) f32.  Matches ThermalRegressionModel.forward (any B)."""
    B, D = x.shape
    assert D == INPUT_SIZE
    blk = _choose_block_b(B, block_b)
    b_pad = pl.cdiv(B, blk) * blk
    compute_dtype = jnp.bfloat16 if use_bf16 else jnp.float32
    # TODO(synk): for large B the x.T / out.T passes below are the dominant
    # non-kernel HBM cost; callers that can keep a (features, batch) layout
    # should use thermal_regression_forward_transposed() and skip them.
    xt = jnp.pad(x.T.astype(compute_dtype), ((0, 0), (0, b_pad - B)))
    out_t = _run_mlp_t(xt, _prep_params(params, compute_dtype), blk)
    return out_t[:, :B].T


@functools.partial(jax.jit, static_argnames=("block_b", "use_bf16"))
def thermal_regression_forward_transposed(xt, params, *, block_b=8192, use_bf16=False):
    """xt: (4, B) f32 -> (2, B) f32.  Transpose-free interface (no wrapper layout passes)."""
    D, B = xt.shape
    assert D == INPUT_SIZE
    blk = _choose_block_b(B, block_b)
    b_pad = pl.cdiv(B, blk) * blk
    compute_dtype = jnp.bfloat16 if use_bf16 else jnp.float32
    xt_p = jnp.pad(xt.astype(compute_dtype), ((0, 0), (0, b_pad - B)))
    out_t = _run_mlp_t(xt_p, _prep_params(params, compute_dtype), blk)
    return out_t[:, :B]


def init_params(key):
    """Deterministic init mimicking nn.Linear default (uniform +/- 1/sqrt(fan_in))."""
    def linear_init(k, fan_in, fan_out):
        kw, kb = jax.random.split(k)
        bound = 1.0 / jnp.sqrt(jnp.float32(fan_in))
        w = jax.random.uniform(kw, (fan_in, fan_out), jnp.float32, -bound, bound)
        b = jax.random.uniform(kb, (1, fan_out), jnp.float32, -bound, bound)
        return w, b

    k1, k2, k3 = jax.random.split(key, 3)
    w1, b1 = linear_init(k1, INPUT_SIZE, HIDDEN_SIZE)
    w2, b2 = linear_init(k2, HIDDEN_SIZE, HIDDEN_SIZE)
    w3, b3 = linear_init(k3, HIDDEN_SIZE, OUTPUT_SIZE)
    return (w1, b1, w2, b2, w3, b3)


def reference_forward(x, params):
    w1, b1, w2, b2, w3, b3 = params
    h1 = jnp.maximum(x @ w1 + b1, 0.0)
    h2 = jnp.maximum(h1 @ w2 + b2, 0.0)
    return h2 @ w3 + b3


if __name__ == "__main__":
    key = jax.random.PRNGKey(0)
    kx1, kx2, kp = jax.random.split(key, 3)
    params = init_params(kp)

    # Small batch: single lane-aligned tile (pad 32 -> 128).
    B1 = 32
    x1 = jax.random.normal(kx1, (B1, INPUT_SIZE), dtype=jnp.float32)
    out1 = jax.block_until_ready(thermal_regression_forward(x1, params, block_b=256))
    ref1 = reference_forward(x1, params)
    assert out1.shape == (B1, OUTPUT_SIZE)
    assert jnp.allclose(out1, ref1, atol=1e-4, rtol=1e-4), "mismatch vs reference (B=32)"

    # Non-multiple-of-128 batch with a multi-step grid (exercises padding + grid loop).
    B2 = 300
    x2 = jax.random.normal(kx2, (B2, INPUT_SIZE), dtype=jnp.float32)
    out2 = jax.block_until_ready(thermal_regression_forward(x2, params, block_b=128))
    ref2 = reference_forward(x2, params)
    assert out2.shape == (B2, OUTPUT_SIZE)
    assert jnp.allclose(out2, ref2, atol=1e-4, rtol=1e-4), "mismatch vs reference (B=300)"

    # Transpose-free interface produces the same result (review option (a)).
    out1_t = jax.block_until_ready(
        thermal_regression_forward_transposed(x1.T, params, block_b=256))
    assert out1_t.shape == (OUTPUT_SIZE, B1)
    assert jnp.allclose(out1_t, out1.T, atol=1e-5, rtol=1e-5), "transposed-interface mismatch"

    print("KERNEL_OK")
</pallas_src>

<mosaic_0001>
module attributes {stable_mosaic.version = 11 : i64} {
  func.func @_mlp_kernel(%arg0: i32, %arg1: memref<4x128xf32, #tpu.memory_space<vmem>>, %arg2: memref<64x4xf32, #tpu.memory_space<vmem>>, %arg3: memref<64x1xf32, #tpu.memory_space<vmem>>, %arg4: memref<64x64xf32, #tpu.memory_space<vmem>>, %arg5: memref<64x1xf32, #tpu.memory_space<vmem>>, %arg6: memref<2x64xf32, #tpu.memory_space<vmem>>, %arg7: memref<2x1xf32, #tpu.memory_space<vmem>>, %arg8: memref<2x128xf32, #tpu.memory_space<vmem>>) attributes {dimension_semantics = [#tpu.dimension_semantics<parallel>], iteration_bounds = array<i64: 1>, scalar_prefetch = 0 : i64, scratch_operands = 0 : i64, tpu.core_type = #tpu.core_type<tc>, window_params = [{transform_indices = @transform_0, window_bounds = array<i64: 4, 128>}, {pipeline_mode = #tpu.pipeline_mode<synchronous>, transform_indices = @transform_1, window_bounds = array<i64: 64, 4>}, {pipeline_mode = #tpu.pipeline_mode<synchronous>, transform_indices = @transform_2, window_bounds = array<i64: 64, 1>}, {pipeline_mode = #tpu.pipeline_mode<synchronous>, transform_indices = @transform_3, window_bounds = array<i64: 64, 64>}, {pipeline_mode = #tpu.pipeline_mode<synchronous>, transform_indices = @transform_4, window_bounds = array<i64: 64, 1>}, {pipeline_mode = #tpu.pipeline_mode<synchronous>, transform_indices = @transform_5, window_bounds = array<i64: 2, 64>}, {pipeline_mode = #tpu.pipeline_mode<synchronous>, transform_indices = @transform_6, window_bounds = array<i64: 2, 1>}, {transform_indices = @transform_7, window_bounds = array<i64: 2, 128>}]} {
    %c0 = arith.constant 0 : index
    %c0_0 = arith.constant 0 : index
    %0 = vector.load %arg1[%c0, %c0_0] : memref<4x128xf32, #tpu.memory_space<vmem>>, vector<4x128xf32>
    %c0_1 = arith.constant 0 : index
    %c0_2 = arith.constant 0 : index
    %1 = vector.load %arg2[%c0_1, %c0_2] : memref<64x4xf32, #tpu.memory_space<vmem>>, vector<64x4xf32>
    %cst = arith.constant dense<0.000000e+00> : vector<64x128xf32>
    %2 = tpu.matmul %1, %0, %cst {dimension_numbers = #tpu.dot_dimension_numbers<[1], [0], [0], [1], [0, 0, 1, 1], [], []>} : vector<64x4xf32>, vector<4x128xf32>, vector<64x128xf32> -> vector<64x128xf32>
    %c0_3 = arith.constant 0 : index
    %c0_4 = arith.constant 0 : index
    %3 = vector.load %arg3[%c0_3, %c0_4] : memref<64x1xf32, #tpu.memory_space<vmem>>, vector<64x1xf32>
    %4 = vector.broadcast %3 : vector<64x1xf32> to vector<64x128xf32>
    %5 = arith.addf %2, %4 : vector<64x128xf32>
    %cst_5 = arith.constant 0.000000e+00 : f32
    %6 = vector.broadcast %cst_5 : f32 to vector<64x128xf32>
    %7 = arith.maximumf %5, %6 : vector<64x128xf32>
    %c0_6 = arith.constant 0 : index
    %c0_7 = arith.constant 0 : index
    %8 = vector.load %arg4[%c0_6, %c0_7] : memref<64x64xf32, #tpu.memory_space<vmem>>, vector<64x64xf32>
    %cst_8 = arith.constant dense<0.000000e+00> : vector<64x128xf32>
    %9 = tpu.matmul %8, %7, %cst_8 {dimension_numbers = #tpu.dot_dimension_numbers<[1], [0], [0], [1], [0, 0, 1, 1], [], []>} : vector<64x64xf32>, vector<64x128xf32>, vector<64x128xf32> -> vector<64x128xf32>
    %c0_9 = arith.constant 0 : index
    %c0_10 = arith.constant 0 : index
    %10 = vector.load %arg5[%c0_9, %c0_10] : memref<64x1xf32, #tpu.memory_space<vmem>>, vector<64x1xf32>
    %11 = vector.broadcast %10 : vector<64x1xf32> to vector<64x128xf32>
    %12 = arith.addf %9, %11 : vector<64x128xf32>
    %cst_11 = arith.constant 0.000000e+00 : f32
    %13 = vector.broadcast %cst_11 : f32 to vector<64x128xf32>
    %14 = arith.maximumf %12, %13 : vector<64x128xf32>
    %c0_12 = arith.constant 0 : index
    %c0_13 = arith.constant 0 : index
    %15 = vector.load %arg6[%c0_12, %c0_13] : memref<2x64xf32, #tpu.memory_space<vmem>>, vector<2x64xf32>
    %cst_14 = arith.constant dense<0.000000e+00> : vector<2x128xf32>
    %16 = tpu.matmul %15, %14, %cst_14 {dimension_numbers = #tpu.dot_dimension_numbers<[1], [0], [0], [1], [0, 0, 1, 1], [], []>} : vector<2x64xf32>, vector<64x128xf32>, vector<2x128xf32> -> vector<2x128xf32>
    %c0_15 = arith.constant 0 : index
    %c0_16 = arith.constant 0 : index
    %17 = vector.load %arg7[%c0_15, %c0_16] : memref<2x1xf32, #tpu.memory_space<vmem>>, vector<2x1xf32>
    %18 = vector.broadcast %17 : vector<2x1xf32> to vector<2x128xf32>
    %19 = arith.addf %16, %18 : vector<2x128xf32>
    %c0_17 = arith.constant 0 : index
    %c0_18 = arith.constant 0 : index
    %20 = vector.load %arg8[%c0_17, %c0_18] : memref<2x128xf32, #tpu.memory_space<vmem>>, vector<2x128xf32>
    tpu.vector_store %arg8[%c0_17, %c0_18], %19 {strides = array<i32>} : memref<2x128xf32, #tpu.memory_space<vmem>>, vector<2x128xf32>,
    return
  }
  func.func @transform_0(%arg0: i32) -> (i32, i32) {
    %c0_i32 = arith.constant 0 : i32
    %c0_i32_0 = arith.constant 0 : i32
    return %c0_i32, %arg0 : i32, i32
  }
  func.func @transform_1(%arg0: i32) -> (i32, i32) {
    %c0_i32 = arith.constant 0 : i32
    %c0_i32_0 = arith.constant 0 : i32
    %c0_i32_1 = arith.constant 0 : i32
    return %c0_i32, %c0_i32_0 : i32, i32
  }
  func.func @transform_2(%arg0: i32) -> (i32, i32) {
    %c0_i32 = arith.constant 0 : i32
    %c0_i32_0 = arith.constant 0 : i32
    %c0_i32_1 = arith.constant 0 : i32
    return %c0_i32, %c0_i32_0 : i32, i32
  }
  func.func @transform_3(%arg0: i32) -> (i32, i32) {
    %c0_i32 = arith.constant 0 : i32
    %c0_i32_0 = arith.constant 0 : i32
    %c0_i32_1 = arith.constant 0 : i32
    return %c0_i32, %c0_i32_0 : i32, i32
  }
  func.func @transform_4(%arg0: i32) -> (i32, i32) {
    %c0_i32 = arith.constant 0 : i32
    %c0_i32_0 = arith.constant 0 : i32
    %c0_i32_1 = arith.constant 0 : i32
    return %c0_i32, %c0_i32_0 : i32, i32
  }
  func.func @transform_5(%arg0: i32) -> (i32, i32) {
    %c0_i32 = arith.constant 0 : i32
    %c0_i32_0 = arith.constant 0 : i32
    %c0_i32_1 = arith.constant 0 : i32
    return %c0_i32, %c0_i32_0 : i32, i32
  }
  func.func @transform_6(%arg0: i32) -> (i32, i32) {
    %c0_i32 = arith.constant 0 : i32
    %c0_i32_0 = arith.constant 0 : i32
    %c0_i32_1 = arith.constant 0 : i32
    return %c0_i32, %c0_i32_0 : i32, i32
  }
  func.func @transform_7(%arg0: i32) -> (i32, i32) {
    %c0_i32 = arith.constant 0 : i32
    %c0_i32_0 = arith.constant 0 : i32
    return %c0_i32, %arg0 : i32, i32
  }
}

</mosaic_0001>

<bundles_post_ra>
// kernel: thermal_regression_forward.1
= control target key start
LH: loop header
LB: loop body
LE: loop exit
PB: predicated region body
PF: predicated region fallthrough
CT: control target
= control target key end

     0   :  { %vm108_vm0 = vcmask 1043456   ;;  %vm83_vm1 = vcmask 31744   ;;  %v651_v3 = vmov 0   ;;  %vm281_vm2 = vcmask 523264   ;;  %s820_s0 = inlined_call_operand.vmem [shape: f32[4,128], index: 0, kind: input, shape index: {}]   ;;  %s821_s1 = inlined_call_operand.vmem [shape: f32[64,4], index: 1, kind: input, shape index: {}]   ;;  %s822_s2 = inlined_call_operand.vmem [shape: f32[64,1], index: 2, kind: input, shape index: {}]   ;;  %s823_s4 = inlined_call_operand.vmem [shape: f32[64,1], index: 4, kind: input, shape index: {}]   ;;  %s824_s6 = inlined_call_operand.vmem [shape: f32[2,1], index: 6, kind: input, shape index: {}]   ;;  %s825_s3 = inlined_call_operand.vmem [shape: f32[64,64], index: 3, kind: input, shape index: {}]   ;;  %s826_s5 = inlined_call_operand.vmem [shape: f32[2,64], index: 5, kind: input, shape index: {}]   ;;  %s827_s7 = inlined_call_operand.vmem [shape: f32[2,128], index: 7, kind: output, shape index: {}]  }
   0x1   :  { %v26_v0 = vld [vmem:[%s820_s0] sm:$0xf]  ;;  %v28_v2 = vld [vmem:[%s821_s1 + $0x8] sm:$0xff]  ;;  %649 = vset.pattern.permute.xlu0 %v651_v3  ;;  %650 = vset.pattern.permute.xlu1 %v651_v3  ;;  %v29_v4 = vld [vmem:[%s821_s1 + $0x10] sm:$0xff]  ;;  %vm653_vm3 = vmmov 0  }
   0x2   :  { %v27_v1 = vld [vmem:[%s821_s1] sm:$0xff]  ;;  %556 = vmatprep.subr.msk.mxu0 %vm108_vm0, %v26_v0  ;;  %v37_v6 = vld [vmem:[%s822_s2 + $0x10] sm:$0xff]  ;;  %v30_v7 = vld [vmem:[%s821_s1 + $0x18] sm:$0xff] }
   0x3   :  { %558 = vmatprep.mubr.msk.f32.mxu0 %vm83_vm1, %v27_v1  ;;  %557 = vmatpush3.msk.msra.mxu0 %vm108_vm0, %v26_v0  ;;  %v35_v5 = vld [vmem:[%s822_s2] sm:$0xff]  ;;  %v36_v9 = vld [vmem:[%s822_s2 + $0x8] sm:$0xff]  ;;  %v38_v10 = vld [vmem:[%s822_s2 + $0x18] sm:$0xff] }
   0x4   :  { %559 = vmatmul.mubr.msk.f32.vlgmr.msra.gmra.mrb[0].mxu0 %vm83_vm1, %v28_v2  ;;  %45 = vperm.xlu0 %649, %v35_v5   ;;  %v31_v8 = vld [vmem:[%s821_s1 + $0x20] sm:$0xff]  ;;  %v32_v11 = vld [vmem:[%s821_s1 + $0x28] sm:$0xff]  ;;  %v33_v12 = vld [vmem:[%s821_s1 + $0x30] sm:$0xff] }
   0x5   :  { %561 = vmatprep.mubr.msk.f32.mxu0 %vm83_vm1, %v29_v4  ;;  %55 = vperm.xlu1 %650, %v37_v6   ;;  %v39_v13 = vld [vmem:[%s822_s2 + $0x20] sm:$0xff]  ;;  %v40_v14 = vld [vmem:[%s822_s2 + $0x28] sm:$0xff]  ;;  %v34_v15 = vld [vmem:[%s821_s1 + $0x38] sm:$0xff] }
   0x6   :  { %v41_v16 = vld [vmem:[%s822_s2 + $0x30] sm:$0xff]  ;;  %v42_v17 = vld [vmem:[%s822_s2 + $0x38] sm:$0xff]  ;;  %v233_v18 = vld [vmem:[%s823_s4] sm:$0xff] }
   0x7   :  { %v234_v19 = vld [vmem:[%s823_s4 + $0x8] sm:$0xff]  ;;  %v235_v20 = vld [vmem:[%s823_s4 + $0x10] sm:$0xff]  ;;  %v236_v21 = vld [vmem:[%s823_s4 + $0x18] sm:$0xff] }
   0x8   :  { %562 = vmatmul.mubr.msk.f32.gmra.mrb[2].mxu0 %vm83_vm1, %v30_v7  ;;  %50 = vperm.xlu0 %649, %v36_v9   ;;  %v237_v22 = vld [vmem:[%s823_s4 + $0x20] sm:$0xff]  ;;  %v238_v23 = vld [vmem:[%s823_s4 + $0x28] sm:$0xff]  ;;  %v239_v24 = vld [vmem:[%s823_s4 + $0x30] sm:$0xff]  ;;  %v652_v7 = vmov 0.0|0.0  }
   0x9   :  { %564 = vmatprep.mubr.msk.f32.mxu0 %vm83_vm1, %v31_v8  ;;  %60 = vperm.xlu1 %650, %v38_v10   ;;  %v240_v25 = vld [vmem:[%s823_s4 + $0x38] sm:$0xff]  ;;  %v420_v26 = vld [vmem:[%s824_s6] sm:$0x3]  ;;  %v226_v0 = vld [vmem:[%s825_s3 + $0x8] sm:$0xff]  ;;  %v654_v8 = vmov 0.0  }
   0xa   :  { %v225_v27 = vld [vmem:[%s825_s3] sm:$0xff]  ;;  %v227_v1 = vld [vmem:[%s825_s3 + $0x10] sm:$0xff]  ;;  %v228_v2 = vld [vmem:[%s825_s3 + $0x18] sm:$0xff]  ;;  %633 = vmatprep.subr.bf16.mxu0 %v652_v7 }
   0xb   :  { %586 = vmatprep.mubr.msk.f32.mxu1 %vm281_vm2, %v225_v27  ;;  %v229_v3 = vld [vmem:[%s825_s3 + $0x20] sm:$0xff]  ;;  %v230_v4 = vld [vmem:[%s825_s3 + $0x28] sm:$0xff]  ;;  %v231_v5 = vld [vmem:[%s825_s3 + $0x30] sm:$0xff] }
   0xc   :  { %565 = vmatmul.mubr.msk.f32.gmra.mrb[4].mxu0 %vm83_vm1, %v32_v11  ;;  %65 = vperm.xlu0 %649, %v39_v13   ;;  %v232_v6 = vld [vmem:[%s825_s3 + $0x38] sm:$0xff] }
   0xd   :  { %567 = vmatprep.mubr.msk.f32.mxu0 %vm83_vm1, %v33_v12  ;;  %70 = vperm.xlu1 %650, %v40_v14  }
  0x10   :  { %568 = vmatmul.mubr.msk.f32.gmra.mrb[6].mxu0 %vm83_vm1, %v34_v15  ;;  %75 = vperm.xlu0 %649, %v41_v16  }
  0x11   :  { %80 = vperm.xlu1 %650, %v42_v17   ;;  %614 = vmatprep.mubr.msk.f32.mxu0 %vm653_vm3, %v654_v8 }
  0x14   :  { %243 = vperm.xlu0 %649, %v233_v18  }
  0x15   :  { %248 = vperm.xlu1 %650, %v234_v19  }
  0x18   :  { %253 = vperm.xlu0 %649, %v235_v20  }
  0x19   :  { %258 = vperm.xlu1 %650, %v236_v21  }
  0x1c   :  { %263 = vperm.xlu0 %649, %v237_v22  }
  0x1d   :  { %268 = vperm.xlu1 %650, %v238_v23  }
  0x20   :  { %273 = vperm.xlu0 %649, %v239_v24  }
  0x21   :  { %278 = vperm.xlu1 %650, %v240_v25  }
  0x24   :  { %423 = vperm.xlu0 %649, %v420_v26  }
  0x83   :  { %v46_v28 = vpop.permute.xlu0 %45 }
  0x84   :  { %v56_v29 = vpop.permute.xlu1 %55 }
  0x87   :  { %v51_v30 = vpop.permute.xlu0 %50 }
  0x88   :  { %v61_v31 = vpop.permute.xlu1 %60 }
  0x8b   :  { %v66_v44 = vpop.permute.xlu0 %65 }
  0x8c   :  { %v71_v41 = vpop.permute.xlu1 %70 }
  0x8f   :  { %v76_v56 = vpop.permute.xlu0 %75 }
  0x90   :  { %v81_v53 = vpop.permute.xlu1 %80 }
  0x93   :  { %v244_v10 = vpop.permute.xlu0 %243 }
  0x94   :  { %v249_v9 = vpop.permute.xlu1 %248 }
  0x97   :  { %v254_v13 = vpop.permute.xlu0 %253 }
  0x98   :  { %v259_v11 = vpop.permute.xlu1 %258 }
  0x9b   :  { %v264_v25 = vpop.permute.xlu0 %263 }
  0x9c   :  { %v269_v22 = vpop.permute.xlu1 %268 }
  0xd7   :  { %v560_v32 = vpop.f32.mrb[0].mxu0 }
  0xd8   :  { %v184_v33 = vadd.f32 %v560_v32, %v51_v30  ;;  %v178_v34 = vpop.f32.mrb[1].mxu0 }
  0xd9   :  { %v179_v35 = vadd.f32 %v178_v34, %v46_v28  ;;  %v279_v34 = vpop.permute.xlu1 %278 }
  0xda   :  { %v218_v36 = vmax.f32 %v184_v33, 0.0 }
  0xdb   :  { %v217_v37 = vmax.f32 %v179_v35, 0.0  ;;  %v563_v38 = vpop.f32.mrb[2].mxu0 }
  0xdc   :  { %v194_v39 = vadd.f32 %v563_v38, %v61_v31  ;;  %v188_v40 = vpop.f32.mrb[3].mxu0 }
  0xdd   :  { %v189_v42 = vadd.f32 %v188_v40, %v56_v29  ;;  %v617_v43 = vpack.c.bf16 %v218_v36, %v217_v37  ;;  %v274_v37 = vpop.permute.xlu0 %273 }
  0xde   :  { %v220_v45 = vmax.f32 %v194_v39, 0.0 }
  0xdf   :  { %v219_v46 = vmax.f32 %v189_v42, 0.0  ;;  %v566_v47 = vpop.f32.mrb[4].mxu0  ;;  %618 = vmatprep.subr.bf16.mxu1 %v617_v43 }
  0xe0   :  { %v204_v48 = vadd.f32 %v566_v47, %v71_v41  ;;  %v198_v49 = vpop.f32.mrb[5].mxu0  ;;  %620 = vmatpush3.bf16.msra.mxu1 %v617_v43 }
  0xe1   :  { %v621_v50 = vpack.c.bf16 %v220_v45, %v219_v46  ;;  %v199_v51 = vadd.f32 %v198_v49, %v66_v44  ;;  %v419_v45 = vld [vmem:[%s826_s5] sm:$0x3]  ;;  %v424_v46 = vpop.permute.xlu0 %423 }
  0xe2   :  { %v222_v52 = vmax.f32 %v204_v48, 0.0 }
  0xe3   :  { %v221_v54 = vmax.f32 %v199_v51, 0.0  ;;  %v569_v55 = vpop.f32.mrb[6].mxu0  ;;  %622 = vmatprep.subr.bf16.mxu1 %v621_v50 }
  0xe4   :  { %v214_v57 = vadd.f32 %v569_v55, %v81_v53  ;;  %v208_v58 = vpop.f32.mrb[7].mxu0  ;;  %624 = vmatpush3.bf16.msra.mxu1 %v621_v50 }
  0xe5   :  { %v625_v59 = vpack.c.bf16 %v222_v52, %v221_v54  ;;  %v209_v60 = vadd.f32 %v208_v58, %v76_v56 }
  0xe6   :  { %v224_v61 = vmax.f32 %v214_v57, 0.0 }
  0xe7   :  { %v223_v62 = vmax.f32 %v209_v60, 0.0  ;;  %626 = vmatprep.subr.bf16.mxu1 %v625_v59 }
  0xe8   :  { %628 = vmatpush3.bf16.msra.mxu1 %v625_v59 }
  0xe9   :  { %v629_v63 = vpack.c.bf16 %v224_v61, %v223_v62 }
  0xeb   :  { %630 = vmatprep.subr.bf16.mxu1 %v629_v63 }
  0xec   :  { %632 = vmatpush3.bf16.msra.mxu1 %v629_v63 }
  0xef   :  { %587 = vmatmul.mubr.msk.f32.vlgmr.msra.gmra.mrb[0].mxu1 %vm281_vm2, %v226_v0 }
  0xf0   :  { %589 = vmatprep.mubr.msk.f32.mxu1 %vm281_vm2, %v227_v1 }
  0xf3   :  { %590 = vmatmul.mubr.msk.f32.gmra.mrb[2].mxu1 %vm281_vm2, %v228_v2 }
  0xf4   :  { %592 = vmatprep.mubr.msk.f32.mxu1 %vm281_vm2, %v229_v3 }
  0xf7   :  { %593 = vmatmul.mubr.msk.f32.gmra.mrb[4].mxu1 %vm281_vm2, %v230_v4 }
  0xf8   :  { %595 = vmatprep.mubr.msk.f32.mxu1 %vm281_vm2, %v231_v5 }
  0xfb   :  { %596 = vmatmul.mubr.msk.f32.gmra.mrb[6].mxu1 %vm281_vm2, %v232_v6 }
 0x1c2   :  { %v588_v12 = vpop.f32.mrb[0].mxu1 }
 0x1c3   :  { %v378_v14 = vadd.f32 %v588_v12, %v249_v9  ;;  %v372_v15 = vpop.f32.mrb[1].mxu1 }
 0x1c4   :  { %v373_v16 = vadd.f32 %v372_v15, %v244_v10 }
 0x1c5   :  { %v412_v17 = vmax.f32 %v378_v14, 0.0 }
 0x1c6   :  { %v411_v18 = vmax.f32 %v373_v16, 0.0  ;;  %v591_v19 = vpop.f32.mrb[2].mxu1 }
 0x1c7   :  { %v388_v20 = vadd.f32 %v591_v19, %v259_v11  ;;  %v382_v21 = vpop.f32.mrb[3].mxu1 }
 0x1c8   :  { %v634_v23 = vpack.c.bf16 %v412_v17, %v411_v18  ;;  %v383_v24 = vadd.f32 %v382_v21, %v254_v13 }
 0x1c9   :  { %v414_v26 = vmax.f32 %v388_v20, 0.0 }
 0x1ca   :  { %v413_v27 = vmax.f32 %v383_v24, 0.0  ;;  %v594_v28 = vpop.f32.mrb[4].mxu1  ;;  %635 = vmatpush3.bf16.msra.mxu0 %v634_v23 }
 0x1cb   :  { %v398_v29 = vadd.f32 %v594_v28, %v269_v22  ;;  %v392_v30 = vpop.f32.mrb[5].mxu1  ;;  %636 = vmatprep.subr.bf16.mxu0 %v652_v7 }
 0x1cc   :  { %v637_v31 = vpack.c.bf16 %v414_v26, %v413_v27  ;;  %v393_v32 = vadd.f32 %v392_v30, %v264_v25 }
 0x1cd   :  { %v416_v33 = vmax.f32 %v398_v29, 0.0 }
 0x1ce   :  { %v415_v35 = vmax.f32 %v393_v32, 0.0  ;;  %v597_v36 = vpop.f32.mrb[6].mxu1  ;;  %638 = vmatpush3.bf16.msra.mxu0 %v637_v31 }
 0x1cf   :  { %v408_v38 = vadd.f32 %v597_v36, %v279_v34  ;;  %v402_v39 = vpop.f32.mrb[7].mxu1  ;;  %639 = vmatprep.subr.bf16.mxu0 %v652_v7 }
 0x1d0   :  { %v640_v40 = vpack.c.bf16 %v416_v33, %v415_v35  ;;  %v403_v41 = vadd.f32 %v402_v39, %v274_v37 }
 0x1d1   :  { %v418_v42 = vmax.f32 %v408_v38, 0.0 }
 0x1d2   :  { %v417_v43 = vmax.f32 %v403_v41, 0.0  ;;  %641 = vmatpush3.bf16.msra.mxu0 %v640_v40 }
 0x1d3   :  { %642 = vmatprep.subr.bf16.mxu0 %v652_v7 }
 0x1d4   :  { %v643_v44 = vpack.c.bf16 %v418_v42, %v417_v43 }
 0x1d6   :  { %644 = vmatpush3.bf16.msra.mxu0 %v643_v44 }
 0x1d9   :  { %615 = vmatmul.mubr.msk.f32.vlgmr.msra.gmra.mrb[8].mxu0 %vm281_vm2, %v419_v45 }
 0x2ac   :  { %v495_v47 = vpop.f32.mrb[8].mxu0 }
 0x2ad   :  { %v496_v48 = vadd.f32 %v495_v47, %v424_v46  ;;  %v616_v49 = vpop.f32.mrb[9].mxu0 }
 0x2af   :  { %499 = vst [vmem:[%s827_s7] sm:$0x3] %v496_v48 }

</bundles_post_ra>
